<compile_context>
chip_gen: v7x
topology: tpu7x:2x2x1
jax: 0.10.0
libtpu: 0.0.40
codegen_flags: <defaults>
</compile_context>

<pallas_src>
import functools

import jax
import jax.numpy as jnp
from jax.experimental import pallas as pl
from jax.experimental.pallas import tpu as pltpu


# ---------------------------------------------------------------------------
# Kernels
# ---------------------------------------------------------------------------
def _mlp_step(x_ref, w1_ref, b1_ref, w2_ref, b2_ref, acc_ref):
    """One f-step of relu(x @ W1 + b1) @ W2 (+ b2) accumulated into acc_ref."""
    f = pl.program_id(1)

    # fc1 tile: (tm, H) @ (H, tf) + (1, tf), then ReLU.
    h = jnp.dot(x_ref[...], w1_ref[...], preferred_element_type=jnp.float32)
    h = jnp.maximum(h + b1_ref[...].astype(jnp.float32), 0.0)

    # fc2 partial product over this F tile: (tm, tf) @ (tf, H), f32 accumulate.
    p = jnp.dot(h.astype(w2_ref.dtype), w2_ref[...],
                preferred_element_type=jnp.float32)

    @pl.when(f == 0)
    def _init():
        acc_ref[...] = p + b2_ref[...].astype(jnp.float32)

    @pl.when(f > 0)
    def _accum():
        acc_ref[...] += p


def mlp_kernel_f32_out(x_ref, w1_ref, b1_ref, w2_ref, b2_ref, o_ref):
    """f32 output: accumulate directly into the resident output block."""
    _mlp_step(x_ref, w1_ref, b1_ref, w2_ref, b2_ref, o_ref)


def mlp_kernel_cast_out(x_ref, w1_ref, b1_ref, w2_ref, b2_ref, o_ref, acc_ref):
    """Non-f32 output: f32 VMEM accumulator, cast on the last f-step."""
    _mlp_step(x_ref, w1_ref, b1_ref, w2_ref, b2_ref, acc_ref)

    @pl.when(pl.program_id(1) == pl.num_programs(1) - 1)
    def _finalize():
        o_ref[...] = acc_ref[...].astype(o_ref.dtype)


# ---------------------------------------------------------------------------
# Tile / VMEM policy
# ---------------------------------------------------------------------------
def _round_up(x, m):
    return ((x + m - 1) // m) * m


def _tpu_vmem_capacity_bytes():
    """Physical per-core VMEM; conservative 64 MiB fallback (v7x)."""
    try:
        cap = int(pltpu.get_tpu_info().vmem_capacity_bytes)
        if cap > 0:
            return cap
    except Exception:  # pragma: no cover - query not available
        pass
    return 64 << 20


def _divisor_f_tile(F, target):
    """Largest 128-multiple divisor of F <= target; else the smallest
    128-multiple divisor of F; else F itself (always divides exactly)."""
    if F <= target:
        return F
    t = (target // 128) * 128
    while t >= 128:
        if F % t == 0:
            return t
        t -= 128
    t = 128
    while t < F:
        if F % t == 0:
            return t
        t += 128
    return F


def _footprint_bytes(tm, tf, nf, H, x_it, w_it, b_it, o_it, use_acc_scratch):
    """VMEM footprint model for one (tm, tf) configuration."""
    wbuf = 1 if nf == 1 else 2                 # resident weights need no 2nd buffer
    n = 2 * tm * H * x_it                      # x tiles (double-buffered)
    n += 2 * tm * H * o_it                     # out tiles (double-buffered)
    n += wbuf * (H * tf + tf * H) * w_it       # W1 column tile + W2 row tile
    n += wbuf * tf * b_it + 2 * H * b_it       # b1 tile + b2
    n += tm * tf * 4 + tm * tf * w_it          # h intermediate (f32) + cast copy
    if use_acc_scratch:
        n += tm * H * 4                        # f32 accumulator scratch
    n += 4 << 20                               # Mosaic internal scratch margin
    return n


_TM_CANDIDATES = (1024, 768, 512, 384, 256, 192, 128, 96, 64, 32, 16, 8)


def _choose_tiles(M, H, F, x_it, w_it, b_it, o_it, use_acc_scratch, budget):
    m8 = _round_up(M, 8)
    cands = sorted(
        {t for t in _TM_CANDIDATES if t <= m8} | ({m8} if m8 <= 1024 else set()),
        reverse=True)
    # Keep >= 2 row tiles when there is enough work (v7x shards the "parallel"
    # axis across its 2 TensorCores); decode-sized M keeps a single tile.
    if M >= 512:
        two = [t for t in cands if pl.cdiv(M, t) >= 2]
        cands = two or cands

    fp = functools.partial(_footprint_bytes, H=H, x_it=x_it, w_it=w_it,
                           b_it=b_it, o_it=o_it,
                           use_acc_scratch=use_acc_scratch)

    # 1) Prefer full weight residency: W1/W2 are DMA'd from HBM exactly once.
    for tm in cands:
        if fp(tm, F, 1) <= budget:
            if tm >= min(256, m8):
                return tm, F
            break  # residency only fits with a tiny tm; stream F instead

    # 2) Stream the ffn dim: maximise tm (AI ~ tm flops per weight byte), keep
    #    tf large enough (>= 256-512) to hide the accumulator RMW.
    for tf_target in (512, 256, 128):
        tf = _divisor_f_tile(F, tf_target)
        nf = F // tf
        for tm in cands:
            if fp(tm, tf, nf) <= budget:
                return tm, tf

    raise ValueError(
        f"MLP tiles do not fit the VMEM budget (M={M}, H={H}, F={F}, "
        f"budget={budget} bytes); the hidden dim would also need tiling.")


# ---------------------------------------------------------------------------
# Wrapper
# ---------------------------------------------------------------------------
def mlp_forward(x, w1, b1, w2, b2, *, tm=None, tf=None):
    """x: (B, S, H); w1: (H, F); b1: (F,); w2: (F, H); b2: (H,)."""
    B, S, H = x.shape
    Hw, F = w1.shape
    assert Hw == H and w2.shape == (F, H)
    assert b1.shape == (F,) and b2.shape == (H,)

    M = B * S
    x2d = x.reshape(M, H)
    out_dtype = x.dtype
    use_acc_scratch = jnp.dtype(out_dtype) != jnp.dtype(jnp.float32)

    x_it = x.dtype.itemsize
    w_it = w1.dtype.itemsize
    b_it = b1.dtype.itemsize
    o_it = jnp.dtype(out_dtype).itemsize

    # Per-generation VMEM policy: leave headroom under the physical capacity.
    cap = _tpu_vmem_capacity_bytes()
    vmem_limit = int(cap - (6 << 20))           # what Mosaic may use
    tile_budget = int(vmem_limit - (8 << 20))   # what our footprint may claim

    if tm is None or tf is None:
        auto_tm, auto_tf = _choose_tiles(M, H, F, x_it, w_it, b_it, o_it,
                                         use_acc_scratch, tile_budget)
        tm = auto_tm if tm is None else tm
        tf = auto_tf if tf is None else tf

    tm = int(min(tm, _round_up(M, 8)))
    assert tm == M or tm % 8 == 0, "tm must be a multiple of 8 (or equal M)"
    assert F % tf == 0, "the F tile must divide the ffn dim exactly"

    nm = pl.cdiv(M, tm)          # tail row tile is masked by Pallas (no pad)
    nf = F // tf
    grid = (nm, nf)

    b1_2d = b1.reshape(1, F)
    b2_2d = b2.reshape(1, H)

    # Advisory cost: padded-row flops; weights re-streamed once per row tile
    # unless they are resident (nf == 1).
    weight_streams = 1 if nf == 1 else nm
    cost = pl.CostEstimate(
        flops=4 * nm * tm * F * H,
        transcendentals=0,
        bytes_accessed=int(M * H * x_it + M * H * o_it
                           + weight_streams * (2 * F * H * w_it + F * b_it)
                           + H * b_it),
    )

    in_specs = [
        pl.BlockSpec((tm, H), lambda i, f: (i, 0)),   # x row tile (resident over f)
        pl.BlockSpec((H, tf), lambda i, f: (0, f)),   # W1 column tile
        pl.BlockSpec((1, tf), lambda i, f: (0, f)),   # b1 tile
        pl.BlockSpec((tf, H), lambda i, f: (f, 0)),   # W2 row tile
        pl.BlockSpec((1, H), lambda i, f: (0, 0)),    # b2 (resident)
    ]
    out_spec = pl.BlockSpec((tm, H), lambda i, f: (i, 0))

    if use_acc_scratch:
        kernel = mlp_kernel_cast_out
        scratch = [pltpu.VMEM((tm, H), jnp.float32)]
    else:
        kernel = mlp_kernel_f32_out   # accumulate into the resident out block
        scratch = []

    out2d = pl.pallas_call(
        kernel,
        out_shape=jax.ShapeDtypeStruct((M, H), out_dtype),
        grid_spec=pltpu.PrefetchScalarGridSpec(
            num_scalar_prefetch=0,
            grid=grid,
            in_specs=in_specs,
            out_specs=out_spec,
            scratch_shapes=scratch,
        ),
        compiler_params=pltpu.CompilerParams(
            dimension_semantics=("parallel", "arbitrary"),
            vmem_limit_bytes=vmem_limit),
        cost_estimate=cost,
    )(x2d, w1, b1_2d, w2, b2_2d)

    return out2d.reshape(B, S, H)


# ---------------------------------------------------------------------------
# Reference + demo
# ---------------------------------------------------------------------------
def _reference(x, w1, b1, w2, b2):
    B, S, H = x.shape
    xf = x.reshape(-1, H).astype(jnp.float32)
    h = jnp.maximum(xf @ w1.astype(jnp.float32) + b1.astype(jnp.float32), 0.0)
    out = h @ w2.astype(jnp.float32) + b2.astype(jnp.float32)
    return out.reshape(B, S, H)


if __name__ == "__main__":
    key = jax.random.PRNGKey(0)
    kx, kw1, kb1, kw2, kb2, kx2 = jax.random.split(key, 6)

    # Small OPT-MLP-shaped demo: hidden=32, ffn=256, batch=2, seq=8.
    B, S, H, F = 2, 8, 32, 256
    x = jax.random.normal(kx, (B, S, H), dtype=jnp.float32)
    # fc1.weight in PyTorch is (F, H); stored transposed as (H, F).
    w1 = jax.random.normal(kw1, (H, F), dtype=jnp.float32) * 0.05
    b1 = jax.random.normal(kb1, (F,), dtype=jnp.float32) * 0.05
    # fc2.weight in PyTorch is (H, F); stored transposed as (F, H).
    w2 = jax.random.normal(kw2, (F, H), dtype=jnp.float32) * 0.05
    b2 = jax.random.normal(kb2, (H,), dtype=jnp.float32) * 0.05

    # 1) Auto tile policy (weight residency path, f32 in-place accumulation).
    out = jax.block_until_ready(mlp_forward(x, w1, b1, w2, b2))
    ref = _reference(x, w1, b1, w2, b2)
    assert jnp.allclose(out, ref, atol=1e-4, rtol=1e-4), "mismatch (auto tiles)"

    # 2) Non-divisible M (3*5=15 rows) with forced small tiles: exercises the
    #    masked tail row tile and the multi-step fused F accumulation.
    B2, S2 = 3, 5
    x2 = jax.random.normal(kx2, (B2, S2, H), dtype=jnp.float32)
    out2 = jax.block_until_ready(mlp_forward(x2, w1, b1, w2, b2, tm=8, tf=128))
    ref2 = _reference(x2, w1, b1, w2, b2)
    assert jnp.allclose(out2, ref2, atol=1e-4, rtol=1e-4), "mismatch (masked M)"

    # 3) bf16 activations/weights: exercises the f32-scratch + cast-out kernel.
    xb, w1b, b1b = x.astype(jnp.bfloat16), w1.astype(jnp.bfloat16), b1.astype(jnp.bfloat16)
    w2b, b2b = w2.astype(jnp.bfloat16), b2.astype(jnp.bfloat16)
    out3 = jax.block_until_ready(mlp_forward(xb, w1b, b1b, w2b, b2b, tm=8, tf=128))
    ref3 = _reference(xb, w1b, b1b, w2b, b2b)
    assert jnp.allclose(out3.astype(jnp.float32), ref3, atol=3e-2, rtol=5e-2), \
        "mismatch (bf16 path)"

    print("KERNEL_OK")
</pallas_src>

<mosaic_0001>
module attributes {stable_mosaic.version = 11 : i64} {
  func.func @mlp_kernel_f32_out(%arg0: i32, %arg1: i32, %arg2: memref<16x32xf32, #tpu.memory_space<vmem>>, %arg3: memref<32x256xf32, #tpu.memory_space<vmem>>, %arg4: memref<1x256xf32, #tpu.memory_space<vmem>>, %arg5: memref<256x32xf32, #tpu.memory_space<vmem>>, %arg6: memref<1x32xf32, #tpu.memory_space<vmem>>, %arg7: memref<16x32xf32, #tpu.memory_space<vmem>>) attributes {dimension_semantics = [#tpu.dimension_semantics<parallel>, #tpu.dimension_semantics<arbitrary>], iteration_bounds = array<i64: 1, 1>, scalar_prefetch = 0 : i64, scratch_operands = 0 : i64, tpu.core_type = #tpu.core_type<tc>, window_params = [{transform_indices = @transform_0, window_bounds = array<i64: 16, 32>}, {transform_indices = @transform_1, window_bounds = array<i64: 32, 256>}, {transform_indices = @transform_2, window_bounds = array<i64: 1, 256>}, {transform_indices = @transform_3, window_bounds = array<i64: 256, 32>}, {pipeline_mode = #tpu.pipeline_mode<synchronous>, transform_indices = @transform_4, window_bounds = array<i64: 1, 32>}, {transform_indices = @transform_5, window_bounds = array<i64: 16, 32>}]} {
    %c0 = arith.constant 0 : index
    %c0_0 = arith.constant 0 : index
    %0 = vector.load %arg2[%c0, %c0_0] : memref<16x32xf32, #tpu.memory_space<vmem>>, vector<16x32xf32>
    %c0_1 = arith.constant 0 : index
    %c0_2 = arith.constant 0 : index
    %1 = vector.load %arg3[%c0_1, %c0_2] : memref<32x256xf32, #tpu.memory_space<vmem>>, vector<32x256xf32>
    %cst = arith.constant dense<0.000000e+00> : vector<16x256xf32>
    %2 = tpu.matmul %0, %1, %cst {dimension_numbers = #tpu.dot_dimension_numbers<[1], [0], [0], [1], [0, 0, 1, 1], [], []>} : vector<16x32xf32>, vector<32x256xf32>, vector<16x256xf32> -> vector<16x256xf32>
    %c0_3 = arith.constant 0 : index
    %c0_4 = arith.constant 0 : index
    %3 = vector.load %arg4[%c0_3, %c0_4] : memref<1x256xf32, #tpu.memory_space<vmem>>, vector<1x256xf32>
    %4 = vector.broadcast %3 : vector<1x256xf32> to vector<16x256xf32>
    %5 = arith.addf %2, %4 : vector<16x256xf32>
    %cst_5 = arith.constant 0.000000e+00 : f32
    %6 = vector.broadcast %cst_5 : f32 to vector<16x256xf32>
    %7 = arith.maximumf %5, %6 : vector<16x256xf32>
    %c0_6 = arith.constant 0 : index
    %c0_7 = arith.constant 0 : index
    %8 = vector.load %arg5[%c0_6, %c0_7] : memref<256x32xf32, #tpu.memory_space<vmem>>, vector<256x32xf32>
    %cst_8 = arith.constant dense<0.000000e+00> : vector<16x32xf32>
    %9 = tpu.matmul %7, %8, %cst_8 {dimension_numbers = #tpu.dot_dimension_numbers<[1], [0], [0], [1], [0, 0, 1, 1], [], []>} : vector<16x256xf32>, vector<256x32xf32>, vector<16x32xf32> -> vector<16x32xf32>
    %c0_i32 = arith.constant 0 : i32
    %10 = arith.cmpi eq, %arg1, %c0_i32 : i32
    %11 = arith.extui %10 : i1 to i32
    %c0_i32_9 = arith.constant 0 : i32
    %12 = arith.cmpi ne, %11, %c0_i32_9 : i32
    scf.if %12 {
      %c0_12 = arith.constant 0 : index
      %c0_13 = arith.constant 0 : index
      %16 = vector.load %arg6[%c0_12, %c0_13] : memref<1x32xf32, #tpu.memory_space<vmem>>, vector<1x32xf32>
      %17 = vector.broadcast %16 : vector<1x32xf32> to vector<16x32xf32>
      %18 = arith.addf %9, %17 : vector<16x32xf32>
      %c0_14 = arith.constant 0 : index
      %c0_15 = arith.constant 0 : index
      %19 = vector.load %arg7[%c0_14, %c0_15] : memref<16x32xf32, #tpu.memory_space<vmem>>, vector<16x32xf32>
      tpu.vector_store %arg7[%c0_14, %c0_15], %18 {strides = array<i32>} : memref<16x32xf32, #tpu.memory_space<vmem>>, vector<16x32xf32>,
    } else {
    }
    %c0_i32_10 = arith.constant 0 : i32
    %13 = arith.cmpi sgt, %arg1, %c0_i32_10 : i32
    %14 = arith.extui %13 : i1 to i32
    %c0_i32_11 = arith.constant 0 : i32
    %15 = arith.cmpi ne, %14, %c0_i32_11 : i32
    scf.if %15 {
      %c0_12 = arith.constant 0 : index
      %c0_13 = arith.constant 0 : index
      %16 = vector.load %arg7[%c0_12, %c0_13] : memref<16x32xf32, #tpu.memory_space<vmem>>, vector<16x32xf32>
      %17 = arith.addf %16, %9 : vector<16x32xf32>
      %c0_14 = arith.constant 0 : index
      %c0_15 = arith.constant 0 : index
      %18 = vector.load %arg7[%c0_14, %c0_15] : memref<16x32xf32, #tpu.memory_space<vmem>>, vector<16x32xf32>
      tpu.vector_store %arg7[%c0_14, %c0_15], %17 {strides = array<i32>} : memref<16x32xf32, #tpu.memory_space<vmem>>, vector<16x32xf32>,
    } else {
    }
    return
  }
  func.func @transform_0(%arg0: i32, %arg1: i32) -> (i32, i32) {
    %c0_i32 = arith.constant 0 : i32
    %c0_i32_0 = arith.constant 0 : i32
    return %arg0, %c0_i32 : i32, i32
  }
  func.func @transform_1(%arg0: i32, %arg1: i32) -> (i32, i32) {
    %c0_i32 = arith.constant 0 : i32
    %c0_i32_0 = arith.constant 0 : i32
    return %c0_i32, %arg1 : i32, i32
  }
  func.func @transform_2(%arg0: i32, %arg1: i32) -> (i32, i32) {
    %c0_i32 = arith.constant 0 : i32
    %c0_i32_0 = arith.constant 0 : i32
    return %c0_i32, %arg1 : i32, i32
  }
  func.func @transform_3(%arg0: i32, %arg1: i32) -> (i32, i32) {
    %c0_i32 = arith.constant 0 : i32
    %c0_i32_0 = arith.constant 0 : i32
    return %arg1, %c0_i32 : i32, i32
  }
  func.func @transform_4(%arg0: i32, %arg1: i32) -> (i32, i32) {
    %c0_i32 = arith.constant 0 : i32
    %c0_i32_0 = arith.constant 0 : i32
    %c0_i32_1 = arith.constant 0 : i32
    return %c0_i32, %c0_i32_0 : i32, i32
  }
  func.func @transform_5(%arg0: i32, %arg1: i32) -> (i32, i32) {
    %c0_i32 = arith.constant 0 : i32
    %c0_i32_0 = arith.constant 0 : i32
    return %arg0, %c0_i32 : i32, i32
  }
}

</mosaic_0001>

<bundles_post_ra>
// kernel: tpu_custom_call.1
= control target key start
LH: loop header
LB: loop body
LE: loop exit
PB: predicated region body
PF: predicated region fallthrough
CT: control target
= control target key end

     0   :  { %v388_v7 = vmov 0.0   ;;  %vm43_vm0 = vcmask 261120   ;;  %s570_s0 = inlined_call_operand.vmem [shape: f32[16,32], index: 0, kind: input, shape index: {}]   ;;  %s571_s1 = inlined_call_operand.vmem [shape: f32[32,256], index: 1, kind: input, shape index: {}]   ;;  %s572_s2 = inlined_call_operand.vmem [shape: f32[1,256], index: 2, kind: input, shape index: {}]   ;;  %s573_s3 = inlined_call_operand.vmem [shape: f32[256,32], index: 3, kind: input, shape index: {}]   ;;  %s574_s4 = inlined_call_operand.vmem [shape: f32[1,32], index: 4, kind: input, shape index: {}]   ;;  %s575_s5 = inlined_call_operand.hbm [shape: f32[16,32], index: 5, kind: output, shape index: {}]  }
   0x1   :  { %v24_v0 = vld [vmem:[%s571_s1 + $0x8] sm:$0xff]  ;;  %v26_v1 = vld [vmem:[%s571_s1 + $0x18] sm:$0xff]  ;;  %v23_v2 = vld [vmem:[%s571_s1] sm:$0xff]  ;;  %114 = vmatprep.mubr.f32.mxu0 %v388_v7 }
   0x2   :  { %v320_v3 = vpack.c.bf16 %v26_v1, %v24_v0  ;;  %v25_v4 = vld [vmem:[%s571_s1 + $0x10] sm:$0xff]  ;;  %v28_v5 = vld [vmem:[%s571_s1 + $0x28] sm:$0xff]  ;;  %v30_v6 = vld [vmem:[%s571_s1 + $0x38] sm:$0xff] }
   0x3   :  { %v322_v8 = vpack.c.bf16 %v25_v4, %v23_v2  ;;  %v324_v9 = vpack.c.bf16 %v30_v6, %v28_v5  ;;  %v27_v10 = vld [vmem:[%s571_s1 + $0x20] sm:$0xff]  ;;  %v29_v11 = vld [vmem:[%s571_s1 + $0x30] sm:$0xff]  ;;  %v148_v13 = vld [vmem:[%s573_s3 + $0x88] sm:$0xff] }
   0x4   :  { %321 = vmatprep.subr.bf16.mxu0 %v320_v3  ;;  %v147_v12 = vld [vmem:[%s573_s3 + $0x80] sm:$0xff]  ;;  %v326_v14 = vpack.c.bf16 %v29_v11, %v27_v10  ;;  %v132_v17 = vld [vmem:[%s573_s3 + $0x8] sm:$0xff]  ;;  %v149_v18 = vld [vmem:[%s573_s3 + $0x90] sm:$0xff] }
   0x5   :  { %323 = vmatpush1.bf16.msra.mxu0 %v322_v8  ;;  %v328_v15 = vpack.c.bf16 %v148_v13, %v147_v12  ;;  %v131_v16 = vld [vmem:[%s573_s3] sm:$0xff]  ;;  %v150_v20 = vld [vmem:[%s573_s3 + $0x98] sm:$0xff]  ;;  %v133_v21 = vld [vmem:[%s573_s3 + $0x10] sm:$0xff] }
   0x6   :  { %325 = vmatprep.subr.bf16.mxu0 %v324_v9  ;;  %v330_v19 = vpack.c.bf16 %v132_v17, %v131_v16  ;;  %v134_v22 = vld [vmem:[%s573_s3 + $0x18] sm:$0xff]  ;;  %v332_v23 = vpack.c.bf16 %v150_v20, %v149_v18  ;;  %v151_v24 = vld [vmem:[%s573_s3 + $0xa0] sm:$0xff]  ;;  %v152_v25 = vld [vmem:[%s573_s3 + $0xa8] sm:$0xff] }
   0x7   :  { %329 = vmatprep.subr.bf16.mxu1 %v328_v15  ;;  %v334_v26 = vpack.c.bf16 %v134_v22, %v133_v21  ;;  %v21_v27 = vld [vmem:[%s570_s0] sm:$0xff]  ;;  %v336_v28 = vpack.c.bf16 %v152_v25, %v151_v24  ;;  %v136_v30 = vld [vmem:[%s573_s3 + $0x28] sm:$0xff]  ;;  %v153_v31 = vld [vmem:[%s573_s3 + $0xb0] sm:$0xff] }
   0x8   :  { %331 = vmatpush3.bf16.msra.mxu1 %v330_v19  ;;  %v135_v29 = vld [vmem:[%s573_s3 + $0x20] sm:$0xff]  ;;  %v154_v32 = vld [vmem:[%s573_s3 + $0xb8] sm:$0xff]  ;;  %v22_v33 = vld [vmem:[%s570_s0 + $0x8] sm:$0xff] }
   0x9   :  { %327 = vmatpush1.bf16.msra.mxu0 %v326_v14  ;;  %333 = vmatprep.subr.bf16.mxu1 %v332_v23  ;;  %v338_v34 = vpack.c.bf16 %v136_v30, %v135_v29  ;;  %v340_v35 = vpack.c.bf16 %v154_v32, %v153_v31  ;;  %v137_v36 = vld [vmem:[%s573_s3 + $0x30] sm:$0xff]  ;;  %v138_v37 = vld [vmem:[%s573_s3 + $0x38] sm:$0xff] }
   0xc   :  { %279 = vmatmul.mubr.msk.f32.vlgmr.msra.gmra.mrb[0].mxu0 %vm43_vm0, %v21_v27  ;;  %335 = vmatpush3.bf16.msra.mxu1 %v334_v26 }
   0xd   :  { %120 = vmatprep.mubr.f32.mxu0 %v388_v7  ;;  %337 = vmatprep.subr.bf16.mxu1 %v336_v28 }
   0xe   :  { %10 = vsyncpa [#allocation3], 0  ;;  %v155_v38 = vld [vmem:[%s573_s3 + $0xc0] sm:$0xff]  ;;  %v156_v39 = vld [vmem:[%s573_s3 + $0xc8] sm:$0xff]  ;;  %v342_v40 = vpack.c.bf16 %v138_v37, %v137_v36  ;;  %v33_v63 = vlaneseq  ;;  %s389_s24 = smov [#allocation2]  }
   0xf   :  { %v344_v41 = vpack.c.bf16 %v156_v39, %v155_v38  ;;  %v139_v42 = vld [vmem:[%s573_s3 + $0x40] sm:$0xff]  ;;  %v140_v43 = vld [vmem:[%s573_s3 + $0x48] sm:$0xff]  ;;  %v157_v44 = vld [vmem:[%s573_s3 + $0xd0] sm:$0xff]  ;;  %s268_s25 = sshll.u32 %s389_s24, 4  ;;  %s269_s25 = int_to_ptr.vmem [resolvable:$true] %s268_s25 }
  0x10   :  { %280 = vmatmul.mubr.msk.f32.gmra.mrb[2].mxu0 %vm43_vm0, %v22_v33  ;;  %339 = vmatpush3.bf16.msra.mxu1 %v338_v34  ;;  %v158_v45 = vld [vmem:[%s573_s3 + $0xd8] sm:$0xff]  ;;  %v346_v46 = vpack.c.bf16 %v140_v43, %v139_v42  ;;  %v141_v48 = vld [vmem:[%s573_s3 + $0x50] sm:$0xff]  ;;  %v159_v50 = vld [vmem:[%s573_s3 + $0xe0] sm:$0xff]  ;;  %v34_v0 = vshrl.u32 %v33_v63, 7  ;;  %s364_s26 = scalar_lea.vmem %s269_s25, 256  ;;  %p369_p1 = scmp.lt.s32.totalorder %s269_s25, %s269_s25 }
  0x11   :  { %341 = vmatprep.subr.bf16.mxu1 %v340_v35  ;;  %v348_v47 = vpack.c.bf16 %v158_v45, %v157_v44  ;;  %v142_v49 = vld [vmem:[%s573_s3 + $0x58] sm:$0xff]  ;;  %v160_v51 = vld [vmem:[%s573_s3 + $0xe8] sm:$0xff]  ;;  %v143_v54 = vld [vmem:[%s573_s3 + $0x60] sm:$0xff]  ;;  %p365_p0 = scmp.ne.s32.totalorder %s269_s25, %s364_s26  ;;  %p370_p2 = scmp.lt.s32.totalorder %s364_s26, %s364_s26 }
  0x12   :  { %v350_v52 = vpack.c.bf16 %v142_v49, %v141_v48  ;;  %v352_v53 = vpack.c.bf16 %v160_v51, %v159_v50  ;;  %v144_v55 = vld [vmem:[%s573_s3 + $0x68] sm:$0xff]  ;;  %v161_v57 = vld [vmem:[%s573_s3 + $0xf0] sm:$0xff]  ;;  %v162_v58 = vld [vmem:[%s573_s3 + $0xf8] sm:$0xff]  ;;  %v35_v1 = vsub.s32 0, %v34_v0  ;;  %v39_v3 = vsub.s32 1, %v34_v0 }
  0x13   :  { %v354_v56 = vpack.c.bf16 %v144_v55, %v143_v54  ;;  %v356_v59 = vpack.c.bf16 %v162_v58, %v161_v57  ;;  %v145_v60 = vld [vmem:[%s573_s3 + $0x70] sm:$0xff]  ;;  %v146_v61 = vld [vmem:[%s573_s3 + $0x78] sm:$0xff]  ;;  %v31_v2 = vld [vmem:[%s572_s2] sm:$0x3]  ;;  %p371_p3 = por %p370_p2, %p369_p1 }
  0x14   :  { %343 = vmatpush3.bf16.msra.mxu1 %v342_v40  ;;  %v358_v62 = vpack.c.bf16 %v146_v61, %v145_v60  ;;  %v36_v4 = vrot.slane %v31_v2, %v35_v1  ;;  %v40_v5 = vrot.slane %v31_v2, %v39_v3  ;;  %v281_v20 = vld [vmem:[%s574_s4] ss:$0 sm:$0xff] }
  0x15   :  { %345 = vmatprep.subr.bf16.mxu1 %v344_v41  ;;  %p372_p4 = pnand %p371_p3, %p365_p0 }
  0x18   :  { %347 = vmatpush3.bf16.msra.mxu1 %v346_v46 }
  0x19   :  { %349 = vmatprep.subr.bf16.mxu1 %v348_v47 }
  0x1c   :  { %351 = vmatpush3.bf16.msra.mxu1 %v350_v52 }
  0x1d   :  { %353 = vmatprep.subr.bf16.mxu1 %v352_v53 }
  0x20   :  { %355 = vmatpush3.bf16.msra.mxu1 %v354_v56 }
  0x21   :  { %357 = vmatprep.subr.bf16.mxu1 %v356_v59 }
  0x24   :  { %359 = vmatpush3.bf16.msra.mxu1 %v358_v62 }
  0xdf   :  { %v116_v6 = vpop.f32.mrb[0].mxu0 }
  0xe0   :  { %v117_v7 = vadd.f32 %v116_v6, %v36_v4  ;;  %v118_v8 = vpop.f32.mrb[1].mxu0 }
  0xe1   :  { %v119_v9 = vadd.f32 %v118_v8, %v40_v5 }
  0xe2   :  { %v127_v12 = vmax.f32 %v117_v7, 0.0 }
  0xe3   :  { %v122_v10 = vpop.f32.mrb[2].mxu0  ;;  %v128_v11 = vmax.f32 %v119_v9, 0.0 }
  0xe4   :  { %v123_v13 = vadd.f32 %v122_v10, %v36_v4  ;;  %v124_v14 = vpop.f32.mrb[3].mxu0 }
  0xe5   :  { %v125_v15 = vadd.f32 %v124_v14, %v40_v5  ;;  %227 = vmatprep.mubr.f32.mxu1 %v128_v11 }
  0xe6   :  { %228 = vmatmul.mubr.f32.vlgmr.msra.gmra.mrb[0].mxu1 %v127_v12  ;;  %v129_v17 = vmax.f32 %v123_v13, 0.0 }
  0xe7   :  { %v130_v16 = vmax.f32 %v125_v15, 0.0 }
  0xe9   :  { %232 = vmatprep.mubr.f32.mxu1 %v130_v16 }
  0xea   :  { %233 = vmatmul.mubr.f32.gmra.mrb[2].mxu1 %v129_v17 }
 0x1b9   :  { %v314_v18 = vpop.f32.mrb[0].mxu1 }
 0x1ba   :  { %v315_v19 = vpop.f32.mrb[1].mxu1 }
 0x1bb   :  { %v316_v21 = vadd.f32 %v315_v19, %v314_v18 }
 0x1bd   :  { %v249_v22 = vadd.f32 %v316_v21, %v281_v20  ;;  %v317_v23 = vpop.f32.mrb[2].mxu1 }
 0x1be   :  { %v318_v24 = vpop.f32.mrb[3].mxu1 }
 0x1bf   :  { %251 = vst.msk [vmem:[#allocation2] sm:$0xff] %vm43_vm0, %v249_v22  ;;  %v319_v25 = vadd.f32 %v318_v24, %v317_v23 }
 0x1c1   :  { %v250_v26 = vadd.f32 %v319_v25, %v281_v20 }
 0x1c3   :  { %252 = vst.msk [vmem:[#allocation2 + $0x8] sm:$0xff] %vm43_vm0, %v250_v26 }
 0x1c4   :  { %375 = shalt.err (!%p372_p4)
}
 0x1c5   :  { %s376_s28 = scalar_lea.hbm %s575_s5, 256 }
 0x1c6   :  { %p377_p5 = scmp.ne.s32.totalorder %s575_s5, %s376_s28  ;;  %p380_p6 = scmp.lt.u32.totalorder %s376_s28, %s575_s5 }
 0x1c8   :  { %p382_p7 = pnand %p380_p6, %p377_p5 }
 0x1ca   :  { %385 = shalt.err (!%p382_p7)
}
 0x1cb   :  { %s390_s8 = smov 128   ;;  %s391_s9 = smov 8  }
 0x1cc   :  { %274 = dma.vmem_to_hbm [thread:$0]  %s269_s25, 256, %s575_s5, [#allocation3], %s390_s8, %s390_s8, %s391_s9  }
 0x1cd   :  { %386 = dma.done.wait [#allocation3], 256  }
 0x1ce   :  { %387 = vsyncadd [#allocation3], 4294967040 }
 0x1cf   :  { %278 = vsyncpa [#allocation3], 1 }

</bundles_post_ra>
